<compile_context>
chip_gen: v6e
topology: v6e:2x2x1
jax: 0.10.0
libtpu: 0.0.40
codegen_flags: <defaults>
</compile_context>

<pallas_src>
import jax
import jax.numpy as jnp
from jax.experimental import pallas as pl
from jax.experimental.pallas import tpu as pltpu

HID = 24        # hidden width of fc1/fc2/fc3
D_OUT = 1       # output layer width
BIAS_COL = 124  # lane column inside the packed slab holding the biases
SLAB_ROWS = 3 * HID + 8  # 80 rows (W1,W2,W3 stacked + 8-row padded output weight)


def _leaky_relu(x, slope=0.01):
    return jnp.where(x > 0, x, slope * x)


def pricenn_kernel(x_ref, w_ref, o_ref):
    """x_ref: (d_in, block_b) feature-major tile. w_ref: (80, 128) packed params.
    o_ref: (1, block_b) lane-dense output tile."""
    d_in = x_ref.shape[0]
    x = x_ref[...]  # (d_in, block_b) f32

    def layer(row0, in_w, h):
        w = w_ref[row0:row0 + HID, 0:in_w]                    # (24, in_w)
        b = w_ref[row0:row0 + HID, BIAS_COL:BIAS_COL + 1]     # (24, 1) -> lane bcast
        return _leaky_relu(
            jnp.dot(w, h, preferred_element_type=jnp.float32) + b)

    h = layer(0 * HID, d_in, x)     # fc1 + LeakyReLU   -> (24, block_b)
    h = layer(1 * HID, HID, h)      # fc2 + LeakyReLU
    h = layer(2 * HID, HID, h)      # fc3 + LeakyReLU

    # Output layer (24 -> 1). The weight row lives in an 8-row padded block so
    # the MXU matmul has an aligned M dim; rows 1..7 are zeros.
    wo = w_ref[3 * HID:3 * HID + 8, 0:HID]                    # (8, 24)
    bo = w_ref[3 * HID:3 * HID + 1, BIAS_COL:BIAS_COL + 1]    # (1, 1)
    z = jnp.dot(wo, h, preferred_element_type=jnp.float32)[0:1, :] + bo
    o_ref[...] = z.astype(o_ref.dtype)


def pack_params(params, d_in):
    """Pack W1,W2,W3,Wout (stored [out, in], PyTorch convention) and all biases
    into one (80, 128) f32 slab."""
    assert d_in <= 120, "d_in must fit left of the bias column in the slab"
    slab = jnp.zeros((SLAB_ROWS, 128), jnp.float32)
    slab = slab.at[0 * HID:1 * HID, 0:d_in].set(params["w1"])
    slab = slab.at[1 * HID:2 * HID, 0:HID].set(params["w2"])
    slab = slab.at[2 * HID:3 * HID, 0:HID].set(params["w3"])
    slab = slab.at[3 * HID:3 * HID + 1, 0:HID].set(params["wout"])
    slab = slab.at[0 * HID:1 * HID, BIAS_COL].set(params["b1"])
    slab = slab.at[1 * HID:2 * HID, BIAS_COL].set(params["b2"])
    slab = slab.at[2 * HID:3 * HID, BIAS_COL].set(params["b3"])
    slab = slab.at[3 * HID, BIAS_COL].set(params["bout"][0])
    return slab


def price_nn_forward(x, params, *, block_b=2048):
    """x: [B, d_in] float32 (PyTorch layout). Returns [B, 1] float32."""
    B, d_in = x.shape

    # Tile sizing: multiple of 128 lanes; keep >= 2 grid blocks when B allows
    # (v7x megacore), never below one 128-lane tile.
    block_b = ((int(block_b) + 127) // 128) * 128
    half_b = (((B + 1) // 2 + 127) // 128) * 128
    block_b = max(128, min(block_b, half_b))

    n_blocks = pl.cdiv(B, block_b)
    B_pad = n_blocks * block_b

    slab = pack_params(params, d_in)

    # Feature-major, zero-padded to the tiled batch size.
    x_fm = jnp.zeros((d_in, B_pad), jnp.float32)
    x_fm = x_fm.at[:, :B].set(x.astype(jnp.float32).T)

    out_fm = pl.pallas_call(
        pricenn_kernel,
        out_shape=jax.ShapeDtypeStruct((D_OUT, B_pad), jnp.float32),
        grid_spec=pltpu.PrefetchScalarGridSpec(
            num_scalar_prefetch=0,
            grid=(n_blocks,),
            in_specs=[
                pl.BlockSpec((d_in, block_b), lambda i: (0, i)),
                pl.BlockSpec(slab.shape, lambda i: (0, 0)),  # resident params
            ],
            out_specs=pl.BlockSpec((D_OUT, block_b), lambda i: (0, i)),
        ),
        compiler_params=pltpu.CompilerParams(
            dimension_semantics=("parallel",),
        ),
    )(x_fm, slab)

    return out_fm[:, :B].T  # [B, 1]


def init_params(key, d_in):
    """PyTorch nn.Linear default init: weight [out, in], bias [out],
    uniform(-1/sqrt(fan_in), +1/sqrt(fan_in))."""
    layers = [("1", d_in, HID), ("2", HID, HID), ("3", HID, HID),
              ("out", HID, D_OUT)]
    params = {}
    for name, fan_in, fan_out in layers:
        key, kw, kb = jax.random.split(key, 3)
        bound = 1.0 / (float(fan_in) ** 0.5)
        params[f"w{name}"] = jax.random.uniform(
            kw, (fan_out, fan_in), jnp.float32, -bound, bound)
        params[f"b{name}"] = jax.random.uniform(
            kb, (fan_out,), jnp.float32, -bound, bound)
    # TODO(synk): fc4 (24->24) exists on the PyTorch module but is never used in
    # forward(); it is intentionally not materialized here.
    return params


def price_nn_reference(x, params):
    h = _leaky_relu(x @ params["w1"].T + params["b1"])
    h = _leaky_relu(h @ params["w2"].T + params["b2"])
    h = _leaky_relu(h @ params["w3"].T + params["b3"])
    return h @ params["wout"].T + params["bout"]


if __name__ == "__main__":
    d_in = 4
    batch = 1000  # non-multiple of the tile size: exercises the padded tail

    key = jax.random.PRNGKey(0)
    key, kx = jax.random.split(key)
    params = init_params(key, d_in)
    x = jax.random.normal(kx, (batch, d_in), dtype=jnp.float32)

    out = price_nn_forward(x, params, block_b=256)
    out = jax.block_until_ready(out)

    ref = price_nn_reference(x, params)
    assert out.shape == (batch, 1), out.shape
    assert jnp.allclose(out, ref, atol=1e-4, rtol=1e-4), (
        float(jnp.max(jnp.abs(out - ref))))

    print("KERNEL_OK")
</pallas_src>

<mosaic_0001>
module attributes {stable_mosaic.version = 11 : i64} {
  func.func @pricenn_kernel(%arg0: i32, %arg1: memref<4x256xf32, #tpu.memory_space<vmem>>, %arg2: memref<80x128xf32, #tpu.memory_space<vmem>>, %arg3: memref<1x256xf32, #tpu.memory_space<vmem>>) attributes {dimension_semantics = [#tpu.dimension_semantics<parallel>], iteration_bounds = array<i64: 4>, scalar_prefetch = 0 : i64, scratch_operands = 0 : i64, tpu.core_type = #tpu.core_type<tc>, window_params = [{transform_indices = @transform_0, window_bounds = array<i64: 4, 256>}, {pipeline_mode = #tpu.pipeline_mode<synchronous>, transform_indices = @transform_1, window_bounds = array<i64: 80, 128>}, {transform_indices = @transform_2, window_bounds = array<i64: 1, 256>}]} {
    %c0 = arith.constant 0 : index
    %c0_0 = arith.constant 0 : index
    %0 = vector.load %arg1[%c0, %c0_0] : memref<4x256xf32, #tpu.memory_space<vmem>>, vector<4x256xf32>
    %c0_1 = arith.constant 0 : index
    %c0_2 = arith.constant 0 : index
    %1 = vector.load %arg2[%c0_1, %c0_2] : memref<80x128xf32, #tpu.memory_space<vmem>>, vector<24x4xf32>
    %c0_3 = arith.constant 0 : index
    %c124 = arith.constant 124 : index
    %2 = vector.load %arg2[%c0_3, %c124] : memref<80x128xf32, #tpu.memory_space<vmem>>, vector<24x1xf32>
    %cst = arith.constant dense<0.000000e+00> : vector<24x256xf32>
    %3 = tpu.matmul %1, %0, %cst {dimension_numbers = #tpu.dot_dimension_numbers<[1], [0], [0], [1], [0, 0, 1, 1], [], []>} : vector<24x4xf32>, vector<4x256xf32>, vector<24x256xf32> -> vector<24x256xf32>
    %4 = vector.broadcast %2 : vector<24x1xf32> to vector<24x256xf32>
    %5 = arith.addf %3, %4 : vector<24x256xf32>
    %cst_4 = arith.constant 0.000000e+00 : f32
    %6 = vector.broadcast %cst_4 : f32 to vector<24x256xf32>
    %7 = arith.cmpf ogt, %5, %6 : vector<24x256xf32>
    %cst_5 = arith.constant 0.00999999977 : f32
    %8 = vector.broadcast %cst_5 : f32 to vector<24x256xf32>
    %9 = arith.mulf %8, %5 : vector<24x256xf32>
    %10 = arith.select %7, %5, %9 : vector<24x256xi1>, vector<24x256xf32>
    %c24 = arith.constant 24 : index
    %c0_6 = arith.constant 0 : index
    %11 = vector.load %arg2[%c24, %c0_6] : memref<80x128xf32, #tpu.memory_space<vmem>>, vector<24x24xf32>
    %c24_7 = arith.constant 24 : index
    %c124_8 = arith.constant 124 : index
    %12 = vector.load %arg2[%c24_7, %c124_8] : memref<80x128xf32, #tpu.memory_space<vmem>>, vector<24x1xf32>
    %cst_9 = arith.constant dense<0.000000e+00> : vector<24x256xf32>
    %13 = tpu.matmul %11, %10, %cst_9 {dimension_numbers = #tpu.dot_dimension_numbers<[1], [0], [0], [1], [0, 0, 1, 1], [], []>} : vector<24x24xf32>, vector<24x256xf32>, vector<24x256xf32> -> vector<24x256xf32>
    %14 = vector.broadcast %12 : vector<24x1xf32> to vector<24x256xf32>
    %15 = arith.addf %13, %14 : vector<24x256xf32>
    %cst_10 = arith.constant 0.000000e+00 : f32
    %16 = vector.broadcast %cst_10 : f32 to vector<24x256xf32>
    %17 = arith.cmpf ogt, %15, %16 : vector<24x256xf32>
    %cst_11 = arith.constant 0.00999999977 : f32
    %18 = vector.broadcast %cst_11 : f32 to vector<24x256xf32>
    %19 = arith.mulf %18, %15 : vector<24x256xf32>
    %20 = arith.select %17, %15, %19 : vector<24x256xi1>, vector<24x256xf32>
    %c48 = arith.constant 48 : index
    %c0_12 = arith.constant 0 : index
    %21 = vector.load %arg2[%c48, %c0_12] : memref<80x128xf32, #tpu.memory_space<vmem>>, vector<24x24xf32>
    %c48_13 = arith.constant 48 : index
    %c124_14 = arith.constant 124 : index
    %22 = vector.load %arg2[%c48_13, %c124_14] : memref<80x128xf32, #tpu.memory_space<vmem>>, vector<24x1xf32>
    %cst_15 = arith.constant dense<0.000000e+00> : vector<24x256xf32>
    %23 = tpu.matmul %21, %20, %cst_15 {dimension_numbers = #tpu.dot_dimension_numbers<[1], [0], [0], [1], [0, 0, 1, 1], [], []>} : vector<24x24xf32>, vector<24x256xf32>, vector<24x256xf32> -> vector<24x256xf32>
    %24 = vector.broadcast %22 : vector<24x1xf32> to vector<24x256xf32>
    %25 = arith.addf %23, %24 : vector<24x256xf32>
    %cst_16 = arith.constant 0.000000e+00 : f32
    %26 = vector.broadcast %cst_16 : f32 to vector<24x256xf32>
    %27 = arith.cmpf ogt, %25, %26 : vector<24x256xf32>
    %cst_17 = arith.constant 0.00999999977 : f32
    %28 = vector.broadcast %cst_17 : f32 to vector<24x256xf32>
    %29 = arith.mulf %28, %25 : vector<24x256xf32>
    %30 = arith.select %27, %25, %29 : vector<24x256xi1>, vector<24x256xf32>
    %c72 = arith.constant 72 : index
    %c0_18 = arith.constant 0 : index
    %31 = vector.load %arg2[%c72, %c0_18] : memref<80x128xf32, #tpu.memory_space<vmem>>, vector<8x24xf32>
    %c72_19 = arith.constant 72 : index
    %c124_20 = arith.constant 124 : index
    %32 = vector.load %arg2[%c72_19, %c124_20] : memref<80x128xf32, #tpu.memory_space<vmem>>, vector<1x1xf32>
    %cst_21 = arith.constant dense<0.000000e+00> : vector<8x256xf32>
    %33 = tpu.matmul %31, %30, %cst_21 {dimension_numbers = #tpu.dot_dimension_numbers<[1], [0], [0], [1], [0, 0, 1, 1], [], []>} : vector<8x24xf32>, vector<24x256xf32>, vector<8x256xf32> -> vector<8x256xf32>
    %34 = vector.extract_strided_slice %33 {offsets = [0, 0], sizes = [1, 256], strides = [1, 1]} : vector<8x256xf32> to vector<1x256xf32>
    %35 = vector.broadcast %32 : vector<1x1xf32> to vector<1x256xf32>
    %36 = arith.addf %34, %35 : vector<1x256xf32>
    %c0_22 = arith.constant 0 : index
    %c0_23 = arith.constant 0 : index
    %37 = vector.load %arg3[%c0_22, %c0_23] : memref<1x256xf32, #tpu.memory_space<vmem>>, vector<1x256xf32>
    tpu.vector_store %arg3[%c0_22, %c0_23], %36 {strides = array<i32>} : memref<1x256xf32, #tpu.memory_space<vmem>>, vector<1x256xf32>,
    return
  }
  func.func @transform_0(%arg0: i32) -> (i32, i32) {
    %c0_i32 = arith.constant 0 : i32
    %c0_i32_0 = arith.constant 0 : i32
    return %c0_i32, %arg0 : i32, i32
  }
  func.func @transform_1(%arg0: i32) -> (i32, i32) {
    %c0_i32 = arith.constant 0 : i32
    %c0_i32_0 = arith.constant 0 : i32
    %c0_i32_1 = arith.constant 0 : i32
    return %c0_i32, %c0_i32_0 : i32, i32
  }
  func.func @transform_2(%arg0: i32) -> (i32, i32) {
    %c0_i32 = arith.constant 0 : i32
    %c0_i32_0 = arith.constant 0 : i32
    return %c0_i32, %arg0 : i32, i32
  }
}

</mosaic_0001>

<bundles_post_ra>
// kernel: tpu_custom_call.1
= control target key start
LH: loop header
LB: loop body
LE: loop exit
PB: predicated region body
PF: predicated region fallthrough
CT: control target
= control target key end

     0   :  { %7 = vsyncpa [#allocation3], 0  ;;  %s1193_s0 = inlined_call_operand.hbm [shape: f32[4,1024], index: 0, kind: input, shape index: {}]   ;;  %s1194_s1 = inlined_call_operand.hbm [shape: f32[80,128], index: 1, kind: input, shape index: {}]   ;;  %s1195_s2 = inlined_call_operand.hbm [shape: f32[1,1024], index: 2, kind: output, shape index: {}]  }
   0x1   :  { %9 = vsyncpa [#allocation3 + $0x1], 0 }
   0x2   :  { %10 = vsyncpa [#allocation6], 0 }
   0x3   :  { %11 = vsyncpa [#allocation4], 0 }
   0x4   :  { %13 = vsyncpa [#allocation4 + $0x1], 0  ;;  %s1007_s9 = smov 0   ;;  %s1009_s10 = smov 0  }
   0x5   :  { %s1011_s11 = smov 0   ;;  %s1013_s12 = smov 0  }
   0x6 LB: > { %s1028_s13 = sadd.s32 4294967295, %s982_s12   ;;  %s763_s14 = sadd.s32 4294967294, %s982_s12   ;;  %s982_s12 = sphi %s1013_s12, %s1216_s12   ;;  %s978_s11 = sphi %s1011_s11, %s1215_s11   ;;  %s974_s10 = sphi %s1009_s10, %s1214_s10   ;;  %s970_s9 = sphi %s1007_s9, %s1213_s9  }
   0x7   : > { %p39_p0 = scmp.ne.s32.totalorder %s974_s10, %s970_s9  ;;  %p1196_p1 = scmp.eq.s32.totalorder %s1028_s13, 0 }
   0x8   : > { %p90_p3 = scmp.eq.s32.totalorder %s763_s14, 3  ;;  %p764_p5 = scmp.ge.s32.totalorder %s982_s12, 1 }
   0x9   : > { %p1037_p4 = por %p1196_p1, %p39_p0  ;;  %p97_p7 = scmp.lt.s32.totalorder %s982_s12, 5 }
   0xa   : > { %p1042_p6 = por %p90_p3, %p39_p0  ;;  %s984_s18 = smov [#allocation5]  }
   0xb   : > { %s1200_s15 = scalar_select %p1037_p4, 1, 0 }
   0xc   : > { %s1201_s16 = scalar_select %p1042_p6, 1, 0 }
   0xd   : > { %p1047_p8 = pnand %p764_p5, %p97_p7  ;;  %s109_s19 = sshll.u32 %s984_s18, 4  ;;  %s110_s19 = int_to_ptr.vmem [resolvable:$true] %s109_s19 }
   0xe   : > { %s1060_s21 = sadd.s32 1, %s982_s12   ;;  %s26_s22 = sadd.s32 1, %s978_s11 }
   0xf   : > { %s1202_s17 = scalar_select %p1047_p8, 1, 0 }
  0x10   : > { %p803_p9 = pneg %p1047_p8  ;;  %s23_s23 = ssub.s32 %s982_s12, %s1060_s21 }
  0x11   : > { %s871_s24 = scalar_lea.vmem %s110_s19, 1280  ;;  %p879_p3 = scmp.lt.s32.totalorder %s110_s19, %s110_s19 }
  0x12   : > { %p1055_p10 = pnand %p803_p9, %p1196_p1  ;;  %p872_p12 = scmp.ne.s32.totalorder %s110_s19, %s871_s24 }
  0x13   : > { %p880_p5 = scmp.lt.s32.totalorder %s871_s24, %s871_s24 }
  0x14   : > { %p862_p11 = pneg %p1055_p10 }
  0x15   : > { %p881_p7 = por %p880_p5, %p879_p3 }
  0x16   : > { %p874_p13 = pnand %p872_p12, %p862_p11 }
  0x18   : > { %p875_p0 = pneg %p874_p13 }
  0x1a   : > { %p882_p2 = pnand %p881_p7, %p875_p0 }
  0x1c   : > { %885 = shalt.err (!%p882_p2)
}
  0x1d   : > { %s985_s25 = smov 128   ;;  %s986_s26 = smov 8  }
  0x1e   : > { %806 = dma.hbm_to_vmem [thread:$0]  (!%p1055_p10), %s1194_s1, 1280, %s110_s19, [#allocation6], %s985_s25, %s985_s25, %s986_s26  }
  0x1f   : > { %p24_p9 = scmp.eq.s32.totalorder %s23_s23, 0  ;;  %p33_p11 = scmp.ne.s32.totalorder %s978_s11, %s974_s10 }
  0x20   : > { %p34_p12 = scmp.eq.s32.totalorder %s982_s12, 0  ;;  %p816_p2 = scmp.lt.s32.totalorder %s982_s12, 4 }
  0x21   : > { %s1077_s29 = scalar_select %p24_p9, %s978_s11, %s26_s22  }
  0x22   : > { %p35_p13 = por %p34_p12, %p33_p11  ;;  %p1204_p0 = scmp.eq.s32.totalorder %s1028_s13, 3 }
  0x23   : > { %s123_s3 = sand.u32 1, %s978_s11   ;;  %s791_s4 = sshll.u32 %s982_s12, 7 }
  0x24   : > { %p1081_p3 = por %p1204_p0, %p33_p11  ;;  %s767_s5 = sshll.u32 %s123_s3, 3 }
  0x25   : > { %s1090_s8 = scalar_lea.hbm %s1193_s0, %s791_s4  ;;  %s127_s14 = scalar_lea.vmem [#allocation2], %s767_s5 }
  0x26   : > { %s1205_s30 = scalar_select %p1081_p3, 1, 0 }
  0x27   : > { %s135_s18 = sshll.u32 %s127_s14, 4  ;;  %p1092_p10 = pnand %p816_p2, %p35_p13  ;;  %s136_s18 = int_to_ptr.vmem [resolvable:$true] %s135_s18 }
  0x28   : > { %s124_s20 = scalar_lea.sflag [#allocation3], %s123_s3  ;;  %s886_s22 = scalar_lea.hbm %s1090_s8, 128 }
  0x29   : > { %p887_p5 = scmp.ne.s32.totalorder %s1090_s8, %s886_s22  ;;  %p888_p7 = pneg %p1092_p10 }
  0x2a   : > { %s891_s25 = scalar_lea.hbm %s1193_s0, 512  ;;  %p892_p12 = scmp.lt.s32.totalorder %s1090_s8, %s1193_s0 }
  0x2b   : > { %p889_p9 = pnand %p888_p7, %p887_p5  ;;  %p893_p2 = scmp.lt.s32.totalorder %s891_s25, %s886_s22 }
  0x2d   : > { %p890_p11 = pneg %p889_p9  ;;  %p894_p13 = por %p893_p2, %p892_p12 }
  0x2f   : > { %p895_p0 = pnand %p894_p13, %p890_p11 }
  0x31   : > { %898 = shalt.err (!%p895_p0)
}
  0x32   : > { %s899_s28 = scalar_lea.vmem %s136_s18, 128  ;;  %s987_s3 = smov [#allocation2]  }
  0x33   : > { %p900_p1 = scmp.ne.s32.totalorder %s136_s18, %s899_s28  ;;  %s904_s4 = sshll.u32 %s987_s3, 4  ;;  %s905_s4 = int_to_ptr.vmem [resolvable:$false] %s904_s4 }
  0x34   : > { %s906_s5 = scalar_lea.vmem %s905_s4, 256  ;;  %p907_p5 = scmp.lt.s32.totalorder %s136_s18, %s905_s4 }
  0x35   : > { %p902_p6 = pnand %p900_p1, %p888_p7  ;;  %p908_p9 = scmp.lt.s32.totalorder %s906_s5, %s899_s28 }
  0x37   : > { %p903_p3 = pneg %p902_p6  ;;  %p909_p4 = por %p908_p9, %p907_p5 }
  0x39   : > { %p910_p8 = pnand %p909_p4, %p903_p3 }
  0x3b   : > { %913 = shalt.err (!%p910_p8)
}
  0x3c   : > { %810 = dma.hbm_to_vmem [thread:$0]  (!%p1092_p10), %s1090_s8, 128, %s136_s18, %s124_s20  }
  0x3d   : > { %p1207_p11 = scmp.ne.s32.totalorder %s1202_s17, 0 }
  0x3e   : > { %s1113_s6 = sand.u32 (!%p1207_p11), 1, %s974_s10   ;;  %p1208_p1 = scmp.ne.s32.totalorder (!%p1207_p11), %s1200_s15, 0 }
  0x3f   : > { %144 = sbr.rel (%p1207_p11) target bundleno = 930 (0x3a2), region = 28  ;;  %s771_s7 = sshll.u32 (!%p1207_p11), %s1113_s6, 3 }
  0x40   : > { %s147_s14 = scalar_lea.sflag (!%p1207_p11), [#allocation3], %s1113_s6  ;;  %s150_s22 = scalar_lea.vmem (!%p1207_p11), [#allocation2], %s771_s7 }
  0x44   : > { %957 = dma.done.wait (%p1208_p1), %s147_s14, 128  }
  0x45   : > { %959 = vsyncadd (%p1208_p1), %s147_s14, 4294967168  ;;  %p1209_p4 = scmp.eq.s32.totalorder %s1028_s13, 0 }
  0x47   : > { %961 = dma.done.wait (%p1209_p4), [#allocation6], 1280   ;;  %p1210_p6 = pmov %p1209_p4 }
  0x48   : > { %v988_v0 = vmov 0.0   ;;  %v989_v1 = vmov 124   ;;  %v177_v2 = vld [vmem:[%s150_s22] sm:$0xff]  ;;  %vm205_vm0 = vcmask 1043456   ;;  %v178_v3 = vld [vmem:[#allocation5] sm:$0xff]  ;;  %vm198_vm1 = vcmask 31744  }
  0x49   : > { %963 = vsyncadd (%p1210_p6), [#allocation6], 4294966016  ;;  %274 = vmatprep.mubr.f32.mxu0 %v988_v0  ;;  %286 = vmatprep.mubr.f32.mxu1 %v988_v0  ;;  %v180_v4 = vld [vmem:[#allocation5 + $0x10] sm:$0xff]  ;;  %v197_v5 = vcombine.high %v177_v2, %v177_v2  ;;  %v1127_v6 = vld [vmem:[#allocation5 + $0x28] sm:$0xff]  ;;  %vm329_vm8 = vcmask 195584   ;;  %s773_s15 = sshll.u32 %s1113_s6, 1 }
  0x4a   : > { %857 = vset.pattern.permute.xlu0 %v989_v1  ;;  %858 = vset.pattern.permute.xlu1 %v989_v1  ;;  %v179_v7 = vld [vmem:[#allocation5 + $0x8] sm:$0xff]  ;;  %v312_v8 = vld [vmem:[#allocation5 + $0x20] sm:$0xff]  ;;  %v311_v9 = vld [vmem:[#allocation5 + $0x18] sm:$0xff]  ;;  %s792_s17 = sshll.u32 %s1028_s13, 5  ;;  %s174_s8 = scalar_lea.vmem [#allocation7], %s773_s15 }
  0x4b   : > { %193 = vperm.xlu0 %857, %v180_v4   ;;  %183 = vperm.xlu1 %858, %v178_v3   ;;  %v1133_v10 = vld [vmem:[#allocation5 + $0x40] sm:$0xff]  ;;  %v1135_v11 = vld [vmem:[#allocation5 + $0x38] sm:$0xff]  ;;  %v1138_v12 = vld [vmem:[#allocation5 + $0x30] sm:$0xff]  ;;  %s683_s18 = sshll.u32 %s174_s8, 4  ;;  %s681_s23 = scalar_lea.hbm %s1195_s2, %s792_s17  ;;  %s684_s18 = int_to_ptr.vmem [resolvable:$true] %s683_s18 }
  0x4c   : > { %774 = vmatprep.subr.msk.mxu0 %vm205_vm0, %v197_v5  ;;  %793 = vmatprep.subr.msk.mxu1 %vm205_vm0, %v197_v5  ;;  %v563_v13 = vld [vmem:[#allocation5 + $0x48] sm:$0x1]  ;;  %s669_s24 = scalar_lea.sflag [#allocation4], %s1113_s6  ;;  %s914_s25 = scalar_lea.vmem %s684_s18, 32 }
  0x4d   : > { %775 = vmatpush1.msk.msra.mxu0 %vm205_vm0, %v177_v2  ;;  %794 = vmatpush1.msk.msra.mxu1 %vm205_vm0, %v177_v2  ;;  %p915_p8 = scmp.ne.s32.totalorder %s684_s18, %s914_s25  ;;  %p1211_p3 = scmp.ne.s32.totalorder %s1205_s30, 0 }
  0x4e   : > { %776 = vmatmul.mubr.msk.f32.vlgmr.msra.gmra.mxu0 %vm198_vm1, %v178_v3  ;;  %778 = vmatmul.mubr.msk.f32.vlgmr.msra.gmra.mxu1 %vm198_vm1, %v180_v4  ;;  %s991_s26 = smov [#allocation7]  }
  0x4f   : > { %280 = vmatprep.mubr.f32.mxu0 %v988_v0  ;;  %188 = vperm.xlu0 %857, %v179_v7   ;;  %p916_p10 = pnand %p915_p8, %p1211_p3  ;;  %s918_s27 = sshll.u32 %s991_s26, 4  ;;  %s919_s27 = int_to_ptr.vmem [resolvable:$false] %s918_s27 }
  0x50   : > { %326 = vperm.xlu1 %858, %v1127_v6   ;;  %400 = vmatprep.mubr.f32.mxu1 %v988_v0  ;;  %s920_s13 = scalar_lea.vmem %s919_s27, 64  ;;  %p921_p12 = scmp.lt.s32.totalorder %s684_s18, %s919_s27 }
  0x51   : > { %p917_p7 = pneg %p916_p10  ;;  %p922_p2 = scmp.lt.s32.totalorder %s920_s13, %s914_s25 }
  0x52   : > { %777 = vmatmul.mubr.msk.f32.gmra.mxu0 %vm198_vm1, %v179_v7 }
  0x53   : > { %321 = vperm.xlu0 %857, %v312_v8   ;;  %525 = vmatprep.mubr.f32.mxu0 %v988_v0  ;;  %p923_p13 = por %p922_p2, %p921_p12 }
  0x54   : > { %316 = vperm.xlu1 %858, %v311_v9  }
  0x55   : > { %p924_p0 = pnand %p923_p13, %p917_p7 }
  0x57   : > { %452 = vperm.xlu0 %857, %v1133_v10  }
  0x58   : > { %447 = vperm.xlu1 %858, %v1135_v11  }
  0x5b   : > { %442 = vperm.xlu0 %857, %v1138_v12  }
  0x5c   : > { %640 = vperm.xlu1 %858, %v563_v13  }
  0xc6   : > { %v194_v14 = vpop.permute.xlu0 %193  ;;  %v184_v20 = vpop.permute.xlu1 %183 }
  0xca   : > { %v189_v21 = vpop.permute.xlu0 %188 }
  0xcb   : > { %v327_v43 = vpop.permute.xlu1 %326 }
  0xce   : > { %v322_v46 = vpop.permute.xlu0 %321 }
  0xcf   : > { %v317_v50 = vpop.permute.xlu1 %316 }
  0xd2   : > { %v453_v7 = vpop.permute.xlu0 %452 }
  0xd3   : > { %v448_v13 = vpop.permute.xlu1 %447 }
 0x10e   : > { %v276_v15 = vpop.f32.mrf.mxu0  ;;  %v288_v16 = vpop.f32.mrf.mxu1 }
 0x10f   : > { %v289_v17 = vadd.f32 %v288_v16, %v194_v14  ;;  %v277_v27 = vadd.f32 %v276_v15, %v184_v20 }
 0x110   : > { %v278_v18 = vpop.f32.mrf.mxu0  ;;  %v290_v19 = vpop.f32.mrf.mxu1 }
 0x111   : > { %v303_v22 = vmul.f32 0.01, %v289_v17  ;;  %v291_v23 = vadd.f32 %v290_v19, %v194_v14  ;;  %vm297_vm2 = vcmp.gt.f32.partialorder %v289_v17, 0.0  ;;  %v279_v25 = vadd.f32 %v278_v18, %v184_v20 }
 0x112   : > { %v282_v24 = vpop.f32.mrf.mxu0  ;;  %v299_v36 = vmul.f32 0.01, %v277_v27  ;;  %vm293_vm7 = vcmp.gt.f32.partialorder %v277_v27, 0.0 }
 0x113   : > { %v283_v26 = vadd.f32 %v282_v24, %v189_v21  ;;  %v304_v28 = vmul.f32 0.01, %v291_v23  ;;  %vm298_vm3 = vcmp.gt.f32.partialorder %v291_v23, 0.0  ;;  %v309_v33 = vsel %vm297_vm2, %v289_v17, %v303_v22 }
 0x114   : > { %v284_v29 = vpop.f32.mrf.mxu0  ;;  %v300_v34 = vmul.f32 0.01, %v279_v25  ;;  %vm294_vm6 = vcmp.gt.f32.partialorder %v279_v25, 0.0  ;;  %v305_v40 = vsel %vm293_vm7, %v277_v27, %v299_v36 }
 0x115   : > { %v285_v30 = vadd.f32 %v284_v29, %v189_v21  ;;  %v301_v31 = vmul.f32 0.01, %v283_v26  ;;  %v310_v32 = vsel %vm298_vm3, %v291_v23, %v304_v28  ;;  %vm295_vm4 = vcmp.gt.f32.partialorder %v283_v26, 0.0 }
 0x116   : > { %362 = vmatprep.subr.mxu1 %v310_v32  ;;  %v306_v39 = vsel %vm294_vm6, %v279_v25, %v300_v34  ;;  %v990_v32 = vmov 1966171168   ;;  %v651_v34 = vlaneseq }
 0x117   : > { %v302_v35 = vmul.f32 0.01, %v285_v30  ;;  %vm296_vm5 = vcmp.gt.f32.partialorder %v285_v30, 0.0  ;;  %363 = vmatpush1.msra.mxu1 %v309_v33  ;;  %v307_v38 = vsel %vm295_vm4, %v283_v26, %v301_v31  ;;  %v649_v33 = vunpack.c.l.s4 %v990_v32 }
 0x118   : > { %v652_v36 = vshrl.u32 %v651_v34, 7 }
 0x119   : > { %v308_v37 = vsel %vm296_vm5, %v285_v30, %v302_v35  ;;  %v562_v30 = vld [vmem:[#allocation5 + $0x48] sm:$0xff]  ;;  %v650_v35 = vunpack.c.0.s8 %v649_v33  ;;  %vm665_vm5 = vcmp.lt.s32.totalorder %v651_v34, 256 }
 0x11a   : > { %364 = vmatprep.subr.mxu1 %v308_v37 }
 0x11b   : > { %365 = vmatpush1.msra.mxu1 %v307_v38  ;;  %v641_v38 = vpop.permute.xlu1 %640 }
 0x11c   : > { %366 = vmatprep.subr.mxu1 %v306_v39 }
 0x11d   : > { %367 = vmatpush1.msra.mxu1 %v305_v40 }
 0x11e   : > { %779 = vmatmul.mubr.msk.f32.vlgmr.msra.gmra.mxu1 %vm329_vm8, %v311_v9 }
 0x11f   : > { %406 = vmatprep.mubr.f32.mxu1 %v988_v0 }
 0x122   : > { %780 = vmatmul.mubr.msk.f32.gmra.mxu1 %vm329_vm8, %v312_v8 }
 0x123   : > { %412 = vmatprep.mubr.f32.mxu1 %v988_v0 }
 0x126   : > { %781 = vmatmul.mubr.msk.f32.gmra.mxu1 %vm329_vm8, %v1127_v6 }
 0x127   : > { %631 = vmatprep.mubr.f32.mxu1 %v988_v0 }
 0x1de   : > { %v402_v41 = vpop.f32.mrf.mxu1 }
 0x1df   : > { %v403_v55 = vadd.f32 %v402_v41, %v317_v50 }
 0x1e0   : > { %v404_v42 = vpop.f32.mrf.mxu1 }
 0x1e1   : > { %v405_v53 = vadd.f32 %v404_v42, %v317_v50  ;;  %v425_v62 = vmul.f32 0.01, %v403_v55  ;;  %vm419_vm14 = vcmp.gt.f32.partialorder %v403_v55, 0.0  ;;  %v653_v42 = vsub.s32 %v650_v35, %v652_v36 }
 0x1e2   : > { %v408_v44 = vpop.f32.mrf.mxu1 }
 0x1e3   : > { %v409_v51 = vadd.f32 %v408_v44, %v322_v46  ;;  %v426_v60 = vmul.f32 0.01, %v405_v53  ;;  %vm420_vm13 = vcmp.gt.f32.partialorder %v405_v53, 0.0  ;;  %v431_v4 = vsel %vm419_vm14, %v403_v55, %v425_v62 }
 0x1e4   : > { %v410_v45 = vpop.f32.mrf.mxu1 }
 0x1e5   : > { %v411_v48 = vadd.f32 %v410_v45, %v322_v46  ;;  %v427_v59 = vmul.f32 0.01, %v409_v51  ;;  %vm421_vm12 = vcmp.gt.f32.partialorder %v409_v51, 0.0  ;;  %v432_v3 = vsel %vm420_vm13, %v405_v53, %v426_v60 }
 0x1e6   : > { %v414_v47 = vpop.f32.mrf.mxu1 }
 0x1e7   : > { %v415_v49 = vadd.f32 %v414_v47, %v327_v43  ;;  %v428_v57 = vmul.f32 0.01, %v411_v48  ;;  %vm422_vm11 = vcmp.gt.f32.partialorder %v411_v48, 0.0  ;;  %v433_v2 = vsel %vm421_vm12, %v409_v51, %v427_v59 }
 0x1e8   : > { %v416_v52 = vpop.f32.mrf.mxu1 }
 0x1e9   : > { %v417_v54 = vadd.f32 %v416_v52, %v327_v43  ;;  %v429_v56 = vmul.f32 0.01, %v415_v49  ;;  %vm423_vm9 = vcmp.gt.f32.partialorder %v415_v49, 0.0  ;;  %v434_v1 = vsel %vm422_vm11, %v411_v48, %v428_v57 }
 0x1eb   : > { %v430_v58 = vmul.f32 0.01, %v417_v54  ;;  %vm424_vm10 = vcmp.gt.f32.partialorder %v417_v54, 0.0  ;;  %v435_v63 = vsel %vm423_vm9, %v415_v49, %v429_v56 }
 0x1ed   : > { %v436_v61 = vsel %vm424_vm10, %v417_v54, %v430_v58 }
 0x1ee   : > { %487 = vmatprep.subr.mxu0 %v436_v61 }
 0x1ef   : > { %488 = vmatpush1.msra.mxu0 %v435_v63 }
 0x1f0   : > { %489 = vmatprep.subr.mxu0 %v434_v1 }
 0x1f1   : > { %490 = vmatpush1.msra.mxu0 %v433_v2 }
 0x1f2   : > { %491 = vmatprep.subr.mxu0 %v432_v3 }
 0x1f3   : > { %492 = vmatpush1.msra.mxu0 %v431_v4 }
 0x1f4   : > { %782 = vmatmul.mubr.msk.f32.vlgmr.msra.gmra.mxu0 %vm329_vm8, %v1138_v12  ;;  %v443_v12 = vpop.permute.xlu0 %442 }
 0x1f5   : > { %531 = vmatprep.mubr.f32.mxu0 %v988_v0 }
 0x1f8   : > { %783 = vmatmul.mubr.msk.f32.gmra.mxu0 %vm329_vm8, %v1135_v11 }
 0x1f9   : > { %537 = vmatprep.mubr.f32.mxu0 %v988_v0 }
 0x1fc   : > { %784 = vmatmul.mubr.msk.f32.gmra.mxu0 %vm329_vm8, %v1133_v10 }
 0x2b4   : > { %v527_v5 = vpop.f32.mrf.mxu0 }
 0x2b5   : > { %v528_v11 = vadd.f32 %v527_v5, %v443_v12 }
 0x2b6   : > { %v529_v6 = vpop.f32.mrf.mxu0 }
 0x2b7   : > { %v530_v19 = vadd.f32 %v529_v6, %v443_v12  ;;  %v550_v25 = vmul.f32 0.01, %v528_v11  ;;  %vm544_vm4 = vcmp.gt.f32.partialorder %v528_v11, 0.0 }
 0x2b8   : > { %v533_v8 = vpop.f32.mrf.mxu0 }
 0x2b9   : > { %v534_v17 = vadd.f32 %v533_v8, %v448_v13  ;;  %v551_v23 = vmul.f32 0.01, %v530_v19  ;;  %vm545_vm3 = vcmp.gt.f32.partialorder %v530_v19, 0.0  ;;  %v556_v31 = vsel %vm544_vm4, %v528_v11, %v550_v25 }
 0x2ba   : > { %v535_v9 = vpop.f32.mrf.mxu0 }
 0x2bb   : > { %v536_v15 = vadd.f32 %v535_v9, %v448_v13  ;;  %v552_v10 = vmul.f32 0.01, %v534_v17  ;;  %vm546_vm2 = vcmp.gt.f32.partialorder %v534_v17, 0.0  ;;  %v557_v29 = vsel %vm545_vm3, %v530_v19, %v551_v23 }
 0x2bc   : > { %v539_v14 = vpop.f32.mrf.mxu0 }
 0x2bd   : > { %v540_v16 = vadd.f32 %v539_v14, %v453_v7  ;;  %v553_v0 = vmul.f32 0.01, %v536_v15  ;;  %vm547_vm1 = vcmp.gt.f32.partialorder %v536_v15, 0.0  ;;  %v558_v28 = vsel %vm546_vm2, %v534_v17, %v552_v10 }
 0x2be   : > { %v541_v18 = vpop.f32.mrf.mxu0 }
 0x2bf   : > { %v542_v20 = vadd.f32 %v541_v18, %v453_v7  ;;  %v554_v21 = vmul.f32 0.01, %v540_v16  ;;  %vm548_vm15 = vcmp.gt.f32.partialorder %v540_v16, 0.0  ;;  %v559_v27 = vsel %vm547_vm1, %v536_v15, %v553_v0 }
 0x2c1   : > { %v555_v22 = vmul.f32 0.01, %v542_v20  ;;  %vm549_vm0 = vcmp.gt.f32.partialorder %v542_v20, 0.0  ;;  %v560_v26 = vsel %vm548_vm15, %v540_v16, %v554_v21 }
 0x2c3   : > { %v561_v24 = vsel %vm549_vm0, %v542_v20, %v555_v22 }
 0x2c4   : > { %593 = vmatprep.subr.mxu1 %v561_v24 }
 0x2c5   : > { %594 = vmatpush1.msra.mxu1 %v560_v26 }
 0x2c6   : > { %595 = vmatprep.subr.mxu1 %v559_v27 }
 0x2c7   : > { %596 = vmatpush1.msra.mxu1 %v558_v28 }
 0x2c8   : > { %597 = vmatprep.subr.mxu1 %v557_v29 }
 0x2c9   : > { %598 = vmatpush1.msra.mxu1 %v556_v31 }
 0x2ca   : > { %785 = vmatmul.mubr.msk.f32.vlgmr.msra.gmra.mxu1 %vm329_vm8, %v562_v30 }
 0x38a   : > { %v633_v37 = vpop.f32.mrf.mxu1 }
 0x38b   : > { %v643_v40 = vadd.f32 %v641_v38, %v633_v37 }
 0x38c   : > { %v635_v39 = vpop.f32.mrf.mxu1 }
 0x38d   : > { %v644_v41 = vadd.f32 %v641_v38, %v635_v39 }
 0x38f   : > { %v647_v43 = vcombine.low %v643_v40, %v644_v41 }
 0x391   : > { %v654_v44 = vrot.slane %v647_v43, %v653_v42 }
 0x393   : > { %v661_v45 = vrot.slane %v654_v44, %v653_v42 }
 0x395   : > { %667 = vst.msk [vmem:[%s174_s8] sm:$0x3] %vm665_vm5, %v661_v45 }
 0x396   : > { %927 = shalt.err (!%p924_p0)
}
 0x397   : > { %s928_s28 = scalar_lea.hbm %s681_s23, 32  ;;  %s932_s5 = scalar_lea.hbm %s1195_s2, 128 }
 0x398   : > { %p929_p5 = scmp.ne.s32.totalorder %s681_s23, %s928_s28  ;;  %p933_p1 = scmp.lt.s32.totalorder %s681_s23, %s1195_s2 }
 0x399   : > { %p934_p4 = scmp.lt.s32.totalorder %s932_s5, %s928_s28 }
 0x39a   : > { %p930_p9 = pnand %p929_p5, %p1211_p3 }
 0x39b   : > { %p935_p6 = por %p934_p4, %p933_p1 }
 0x39c   : > { %p931_p11 = pneg %p930_p9 }
 0x39e   : > { %p936_p8 = pnand %p935_p6, %p931_p11 }
 0x3a0   : > { %939 = shalt.err (!%p936_p8)
}
 0x3a1   : > { %801 = dma.vmem_to_hbm [thread:$0]  (%p1211_p3), %s684_s18, 32, %s681_s23, %s669_s24  }
 0x3a2 PF: > { %p818_p10 = scmp.ge.s32.totalorder %s982_s12, 2  ;;  %s695_s14 = sand.u32 1, %s970_s9  }
 0x3a3   : > { %p1212_p7 = scmp.ne.s32.totalorder %s1201_s16, 0  ;;  %s696_s22 = scalar_lea.sflag [#allocation4], %s695_s14 }
 0x3a5   : > { %p812_p12 = pnand %p818_p10, %p1212_p7 }
 0x3a7   : > { %p813_p2 = pneg %p812_p12 }
 0x3a9   : > { %965 = dma.done.wait (%p813_p2), %s696_s22, 32  }
 0x3aa   : > { %967 = vsyncadd (%p813_p2), %s696_s22, 4294967264  ;;  %p16_p13 = scmp.ge.s32.totalorder %s1060_s21, 6   ;;  %s1213_s9 = smov %s974_s10 }
 0x3ab   : > { %s1214_s10 = smov %s978_s11  ;;  %s1215_s11 = smov %s1077_s29 }
 0x3ac   : > { %s1216_s12 = smov %s1060_s21  ;;  %18 = sbr.rel (!%p16_p13) target bundleno = 6 (0x6), region = 77 }
 0x3b1   :  { %701 = vsyncpa [#allocation3], 1 }
 0x3b2   :  { %703 = vsyncpa [#allocation3 + $0x1], 1 }
 0x3b3   :  { %704 = vsyncpa [#allocation6], 1 }
 0x3b4   :  { %705 = vsyncpa [#allocation4], 1 }
 0x3b5   :  { %707 = vsyncpa [#allocation4 + $0x1], 1 }

</bundles_post_ra>
